<compile_context>
chip_gen: v7x
topology: tpu7x:2x2x1
jax: 0.10.0
libtpu: 0.0.40
codegen_flags: <defaults>
</compile_context>

<pallas_src>
import functools
import math

import jax
import jax.numpy as jnp
from jax.experimental import pallas as pl
from jax.experimental.pallas import tpu as pltpu


# --------------------------------------------------------------------------
# Interpolation matrices (exact PyTorch coordinate conventions).
# --------------------------------------------------------------------------
def _interp_matrix(out_size: int, in_size: int, align_corners: bool):
    """(out_size, in_size) linear-interpolation matrix matching torch."""
    out_idx = jnp.arange(out_size, dtype=jnp.float32)
    if align_corners:
        scale = (in_size - 1) / (out_size - 1) if out_size > 1 else 0.0
        src = out_idx * scale
    else:
        scale = in_size / out_size
        src = (out_idx + 0.5) * scale - 0.5
        src = jnp.maximum(src, 0.0)        # PyTorch clamps negative coords
    i0 = jnp.clip(jnp.floor(src).astype(jnp.int32), 0, in_size - 1)
    i1 = jnp.clip(i0 + 1, 0, in_size - 1)
    w1 = src - i0.astype(jnp.float32)
    w0 = 1.0 - w1
    rows = jnp.arange(out_size)
    mat = jnp.zeros((out_size, in_size), dtype=jnp.float32)
    mat = mat.at[rows, i0].add(w0)
    mat = mat.at[rows, i1].add(w1)
    return mat


def _nearest_matrix(out_size: int, in_size: int):
    src = jnp.floor(jnp.arange(out_size, dtype=jnp.float32)
                    * (in_size / out_size)).astype(jnp.int32)
    src = jnp.clip(src, 0, in_size - 1)
    return jnp.zeros((out_size, in_size), jnp.float32).at[
        jnp.arange(out_size), src].set(1.0)


# --------------------------------------------------------------------------
# Pallas kernel.
# --------------------------------------------------------------------------
def _resize_kernel(rh_ref, rwt_ref, x_ref, o_ref):
    """Separable bilinear resize of TB images, natural lane-dense output.

    rh_ref : (Ho, H)       resident H-interp matrix (f32)
    rwt_ref: (W, Wo)       resident, pre-transposed W-interp matrix
    x_ref  : (TB, H, W)    TB input images
    o_ref  : (TB, Ho, Wo)  natural layout; Wo >= 128 on the default dispatch
                           path so stores are unmasked lane-dense `vst`s.
    """
    tb, h, w = x_ref.shape
    ho = rh_ref.shape[0]
    wo = rwt_ref.shape[1]
    cdt = rwt_ref.dtype                          # bf16 for bf16 inputs else f32

    # TODO(synk): optionally fuse the GroupNorm affine + ReLU that precede
    # every upsample in FPN_Head as a prologue on x here (free VPU slack).

    # W-interp: one big canonical (M,K)@(K,N) MXU matmul over all TB*H rows.
    # The leading-dim collapse is layout-free because H % 8 == 0 (dispatch).
    x2 = x_ref[...].reshape(tb * h, w).astype(cdt)
    t = jnp.dot(x2, rwt_ref[...], preferred_element_type=jnp.float32)  # (TB*H, Wo)

    # H-interp: canonical batched (Ho,H)@(H,Wo).  Only the small resident Rh
    # is broadcast (TB*Ho*H f32 << output block); the f32 intermediate is kept
    # (no bf16 mid-cast), and the result lands directly in natural
    # (TB, Ho, Wo) layout -> no transpose of any large tensor, in-kernel or
    # in XLA.
    t = t.reshape(tb, h, wo)
    rh_b = jnp.broadcast_to(rh_ref[...], (tb, ho, h))
    o = jax.lax.dot_general(rh_b, t, (((2,), (1,)), ((0,), (0,))),
                            preferred_element_type=jnp.float32)        # (TB,Ho,Wo)
    o_ref[...] = o.astype(o_ref.dtype)


# --------------------------------------------------------------------------
# Generation-aware sizing.
# --------------------------------------------------------------------------
@functools.lru_cache(maxsize=None)
def _vmem_plan():
    """v5e/v6e: 128 MiB VMEM, 1 TensorCore -> big blocks, no grid-split clamp.
    v7x: 64 MiB per TC, 2 TCs -> conservative limit + keep >= 2 grid steps."""
    try:
        cap = int(pltpu.get_tpu_info().vmem_capacity_bytes)
    except Exception:
        cap = 64 * 1024 * 1024                   # conservative default
    if cap >= 96 * 1024 * 1024:                  # 128-MiB parts (v5e / v6e)
        return {"limit": 100 * 1024 * 1024,
                "budget": 40 * 1024 * 1024,
                "multi_tc": False}
    return {"limit": 48 * 1024 * 1024,           # 64-MiB parts (v7x)
            "budget": 18 * 1024 * 1024,
            "multi_tc": True}


def _largest_divisor_le(n, cap):
    cap = max(1, min(cap, n))
    for d in range(cap, 0, -1):
        if n % d == 0:
            return d
    return 1


def _pick_block_images(n_images, h, w, ho, wo, in_itemsize, out_itemsize):
    """Images per grid step, sized against the generation-specific budget."""
    plan = _vmem_plan()
    # Per-step residents: double-buffered in/out blocks, the compute-dtype
    # copy of the input rows, the f32 W-interpolated intermediate, the f32
    # pre-store result, and the broadcast Rh.
    per_image = (3 * h * w * in_itemsize
                 + 2 * ho * wo * out_itemsize
                 + h * wo * 4 + ho * wo * 4 + ho * h * 4)
    tb = int(plan["budget"] // max(per_image, 1))
    tb = max(1, min(tb, 1024, n_images))
    if plan["multi_tc"] and n_images >= 2:
        # keep >= 2 grid steps so the "parallel" axis feeds both TensorCores
        # on megacore parts; single-TC parts skip this (a grid is a serial
        # loop there, so halving TB would only add per-step overhead).
        tb = min(tb, (n_images + 1) // 2)
    # Prefer a divisor of n_images so the wrapper never needs a jnp.pad copy.
    div = _largest_divisor_le(n_images, tb)
    if 2 * div >= tb:
        tb = div
    return tb


# --------------------------------------------------------------------------
# pallas_call wrapper.
# --------------------------------------------------------------------------
def _resize_pallas(rh, rwt, x_flat, out_dtype):
    bc, h, w = x_flat.shape
    ho, wo = rh.shape[0], rwt.shape[1]
    tb = _pick_block_images(bc, h, w, ho, wo,
                            jnp.dtype(x_flat.dtype).itemsize,
                            jnp.dtype(out_dtype).itemsize)
    nblk = pl.cdiv(bc, tb)
    bc_pad = nblk * tb
    if bc_pad != bc:                             # ragged tail (no usable divisor)
        x_flat = jnp.pad(x_flat, ((0, bc_pad - bc), (0, 0), (0, 0)))

    out = pl.pallas_call(
        _resize_kernel,
        out_shape=jax.ShapeDtypeStruct((bc_pad, ho, wo), out_dtype),
        grid_spec=pltpu.PrefetchScalarGridSpec(
            num_scalar_prefetch=0,
            grid=(nblk,),
            in_specs=[
                pl.BlockSpec((ho, h), lambda i: (0, 0)),       # Rh   (resident)
                pl.BlockSpec((w, wo), lambda i: (0, 0)),       # Rw^T (resident)
                pl.BlockSpec((tb, h, w), lambda i: (i, 0, 0)),
            ],
            # Output writeback dominates HBM traffic (scale^2 x the input).
            # If a trace ever shows exposed output DMA at the pipeline tail,
            # add pipeline_mode=pl.Buffered(3) HERE (not on the input spec).
            out_specs=pl.BlockSpec((tb, ho, wo), lambda i: (i, 0, 0)),
        ),
        compiler_params=pltpu.CompilerParams(
            dimension_semantics=("parallel",),
            vmem_limit_bytes=_vmem_plan()["limit"]),
    )(rh, rwt, x_flat)
    return out[:bc]


def interpolate(x, *, scale_factor=2, mode="bilinear", align_corners=False,
                min_pallas_wo=128):
    """Pallas equivalent of Interpolate(scale_factor, mode, align_corners)(x)."""
    if mode not in ("bilinear", "nearest"):
        raise NotImplementedError(f"mode={mode!r} not supported")

    B, C, H, W = x.shape
    Ho, Wo = int(H * scale_factor), int(W * scale_factor)

    if mode == "nearest":
        # TODO(synk): a pure replication (strided-read / DMA) kernel would beat
        # the 0/1-matmul formulation if the nearest path ever becomes hot.
        rh, rw = _nearest_matrix(Ho, H), _nearest_matrix(Wo, W)
    else:
        rh = _interp_matrix(Ho, H, align_corners)
        rw = _interp_matrix(Wo, W, align_corners)

    # Tiny pyramid levels (output lane dim < 128, or H not sublane-aligned):
    # lane padding + launch overhead would dominate a kernel; XLA is as fast.
    if Wo < min_pallas_wo or H % 8 != 0:
        out = jnp.einsum("oh,bchw,pw->bcop", rh, x.astype(jnp.float32), rw,
                         precision=jax.lax.Precision.HIGHEST)
        return out.astype(x.dtype)

    cdt = jnp.bfloat16 if x.dtype == jnp.bfloat16 else jnp.float32
    # TODO(synk): opt-in bf16 compute path for f32 inputs on v5e would halve
    # MXU passes / intermediate traffic (violates the tight f32 tolerance).
    rh = rh.astype(jnp.float32)                  # 2nd matmul stays f32
    rwt = rw.T.astype(cdt)                       # hoisted transpose: (W, Wo)

    x_flat = x.reshape(B * C, H, W)
    out = _resize_pallas(rh, rwt, x_flat, x.dtype)
    return out.reshape(B, C, Ho, Wo)


# --------------------------------------------------------------------------
# FPN_Head forward (pointwise pieces are jnp glue; upsampling uses the kernel).
# --------------------------------------------------------------------------
def _conv1x1(x, w, b):                            # x (B,C,H,W), w (O,C), b (O,)
    return jnp.einsum("bchw,oc->bohw", x, w) + b[None, :, None, None]


def _group_norm(x, gamma, beta, num_groups, eps=1e-5):
    B, C, H, W = x.shape
    xg = x.reshape(B, num_groups, C // num_groups, H, W)
    mu = xg.mean(axis=(2, 3, 4), keepdims=True)
    var = jnp.mean((xg - mu) ** 2, axis=(2, 3, 4), keepdims=True)
    xg = (xg - mu) * jax.lax.rsqrt(var + eps)
    x = xg.reshape(B, C, H, W)
    return x * gamma[None, :, None, None] + beta[None, :, None, None]


def init_fpn_params(key, feature_strides, in_channels, out_channel, class_size):
    heads = []
    for i, stride in enumerate(feature_strides):
        head_len = max(1, int(math.log2(stride) - math.log2(feature_strides[0])))
        blocks = []
        for k in range(head_len):
            cin = in_channels[i] if k == 0 else out_channel
            key, kw, kb = jax.random.split(key, 3)
            w = jax.random.normal(kw, (out_channel, cin), jnp.float32) / math.sqrt(cin)
            b = 0.01 * jax.random.normal(kb, (out_channel,), jnp.float32)
            blocks.append((w, b,
                           jnp.ones((out_channel,), jnp.float32),
                           jnp.zeros((out_channel,), jnp.float32)))
        heads.append(blocks)
    key, kw = jax.random.split(key)
    seg_w = 0.1 * jax.random.normal(kw, (class_size, out_channel), jnp.float32)
    seg_b = jnp.zeros((class_size,), jnp.float32)
    return {"heads": heads, "seg": (seg_w, seg_b)}


def fpn_head_forward(params, inputs, feature_strides, graph_size, interp):
    """FPN_Head.forward; `interp(x, scale_factor, align_corners)` upsamples."""
    out = None
    for i, stride in enumerate(feature_strides):
        z = inputs[i]
        for (w, b, gamma, beta) in params["heads"][i]:
            z = _conv1x1(z, w, b)
            z = _group_norm(z, gamma, beta, graph_size)
            z = jnp.maximum(z, 0.0)
            if stride != feature_strides[0]:
                z = interp(z, scale_factor=2, align_corners=True)
        out = z if out is None else out + z
    seg_w, seg_b = params["seg"]
    out = _conv1x1(out, seg_w, seg_b)
    return interp(out, scale_factor=4, align_corners=True)


# --------------------------------------------------------------------------
if __name__ == "__main__":
    root = jax.random.PRNGKey(0)
    kx, kp, k0, k1, k2, k3 = jax.random.split(root, 6)

    # ---- 1. Pallas resize kernel on the lane-dense path (Wo >= 128) ----
    B, C, H, W = 2, 4, 64, 64
    x = jax.random.normal(kx, (B, C, H, W), dtype=jnp.float32)
    for scale, align in ((2, True), (4, True), (2, False)):
        out = jax.block_until_ready(
            interpolate(x, scale_factor=scale, mode="bilinear",
                        align_corners=align))
        Ho, Wo = H * scale, W * scale
        ref = jnp.einsum("oh,bchw,pw->bcop",
                         _interp_matrix(Ho, H, align), x,
                         _interp_matrix(Wo, W, align),
                         precision=jax.lax.Precision.HIGHEST)
        assert out.shape == (B, C, Ho, Wo), out.shape
        err = float(jnp.max(jnp.abs(out - ref)))
        assert jnp.allclose(out, ref, atol=1e-5, rtol=1e-5), err

    # small shapes forced through the Pallas kernel (masked-store regime)
    xs = jax.random.normal(kx, (2, 4, 16, 16), dtype=jnp.float32)
    outs = jax.block_until_ready(
        interpolate(xs, scale_factor=2, mode="bilinear", align_corners=True,
                    min_pallas_wo=0))
    refs = jnp.einsum("oh,bchw,pw->bcop",
                      _interp_matrix(32, 16, True), xs,
                      _interp_matrix(32, 16, True),
                      precision=jax.lax.Precision.HIGHEST)
    assert jnp.allclose(outs, refs, atol=1e-5, rtol=1e-5)

    # bf16 inputs drive the MXU in bf16 with f32 accumulation (2nd matmul f32)
    xb = x.astype(jnp.bfloat16)
    outb = jax.block_until_ready(
        interpolate(xb, scale_factor=2, mode="bilinear", align_corners=True))
    refb = jnp.einsum("oh,bchw,pw->bcop",
                      _interp_matrix(2 * H, H, True),
                      xb.astype(jnp.float32),
                      _interp_matrix(2 * W, W, True),
                      precision=jax.lax.Precision.HIGHEST)
    assert jnp.allclose(outb.astype(jnp.float32), refb, atol=5e-2, rtol=5e-2)

    # nearest mode (exact replication)
    outn = jax.block_until_ready(
        interpolate(x, scale_factor=2, mode="nearest"))
    idx = jnp.arange(2 * H) // 2
    refn = x[:, :, idx, :][:, :, :, idx]
    assert jnp.allclose(outn, refn, atol=1e-6)

    # ---- 2. full FPN_Head forward (final 4x upsample runs the Pallas kernel,
    #         tiny pyramid levels auto-route to the XLA path) ----
    feature_strides = (4, 8, 16, 32)
    in_channels = (8, 16, 16, 32)
    out_channel, graph_size, class_size = 32, 32, 1
    base = 64                                    # stride-4 feature resolution
    kin = (k0, k1, k2, k3)
    inputs = []
    for i, s in enumerate(feature_strides):
        hw = base // (s // feature_strides[0])
        inputs.append(jax.random.normal(kin[i], (2, in_channels[i], hw, hw),
                                        dtype=jnp.float32))
    params = init_fpn_params(kp, feature_strides, in_channels, out_channel,
                             class_size)

    def pallas_interp(z, scale_factor, align_corners):
        return interpolate(z, scale_factor=scale_factor, mode="bilinear",
                           align_corners=align_corners)

    def xla_interp(z, scale_factor, align_corners):      # reference upsampler
        _, _, h, w = z.shape
        return jnp.einsum("oh,bchw,pw->bcop",
                          _interp_matrix(h * scale_factor, h, align_corners), z,
                          _interp_matrix(w * scale_factor, w, align_corners),
                          precision=jax.lax.Precision.HIGHEST).astype(z.dtype)

    seg = jax.block_until_ready(
        fpn_head_forward(params, inputs, feature_strides, graph_size,
                         pallas_interp))
    seg_ref = fpn_head_forward(params, inputs, feature_strides, graph_size,
                               xla_interp)
    assert seg.shape == (2, class_size, 4 * base, 4 * base), seg.shape
    err = float(jnp.max(jnp.abs(seg - seg_ref)))
    assert jnp.allclose(seg, seg_ref, atol=1e-3, rtol=1e-3), err

    print("KERNEL_OK")
</pallas_src>

<mosaic_0001>
module attributes {stable_mosaic.version = 11 : i64} {
  func.func @_resize_kernel(%arg0: i32, %arg1: memref<128x64xf32, #tpu.memory_space<vmem>>, %arg2: memref<64x128xf32, #tpu.memory_space<vmem>>, %arg3: memref<4x64x64xf32, #tpu.memory_space<vmem>>, %arg4: memref<4x128x128xf32, #tpu.memory_space<vmem>>) attributes {dimension_semantics = [#tpu.dimension_semantics<parallel>], iteration_bounds = array<i64: 2>, scalar_prefetch = 0 : i64, scratch_operands = 0 : i64, tpu.core_type = #tpu.core_type<tc>, window_params = [{pipeline_mode = #tpu.pipeline_mode<synchronous>, transform_indices = @transform_0, window_bounds = array<i64: 128, 64>}, {pipeline_mode = #tpu.pipeline_mode<synchronous>, transform_indices = @transform_1, window_bounds = array<i64: 64, 128>}, {transform_indices = @transform_2, window_bounds = array<i64: 4, 64, 64>}, {transform_indices = @transform_3, window_bounds = array<i64: 4, 128, 128>}]} {
    %c0 = arith.constant 0 : index
    %c0_0 = arith.constant 0 : index
    %c0_1 = arith.constant 0 : index
    %0 = vector.load %arg3[%c0, %c0_0, %c0_1] : memref<4x64x64xf32, #tpu.memory_space<vmem>>, vector<4x64x64xf32>
    %1 = vector.shape_cast %0 : vector<4x64x64xf32> to vector<256x64xf32>
    %c0_2 = arith.constant 0 : index
    %c0_3 = arith.constant 0 : index
    %2 = vector.load %arg2[%c0_2, %c0_3] : memref<64x128xf32, #tpu.memory_space<vmem>>, vector<64x128xf32>
    %cst = arith.constant dense<0.000000e+00> : vector<256x128xf32>
    %3 = tpu.matmul %1, %2, %cst {dimension_numbers = #tpu.dot_dimension_numbers<[1], [0], [0], [1], [0, 0, 1, 1], [], []>} : vector<256x64xf32>, vector<64x128xf32>, vector<256x128xf32> -> vector<256x128xf32>
    %4 = vector.shape_cast %3 : vector<256x128xf32> to vector<4x64x128xf32>
    %c0_4 = arith.constant 0 : index
    %c0_5 = arith.constant 0 : index
    %5 = vector.load %arg1[%c0_4, %c0_5] : memref<128x64xf32, #tpu.memory_space<vmem>>, vector<128x64xf32>
    %6 = vector.shape_cast %5 : vector<128x64xf32> to vector<1x128x64xf32>
    %7 = vector.broadcast %6 : vector<1x128x64xf32> to vector<4x128x64xf32>
    %cst_6 = arith.constant dense<0.000000e+00> : vector<4x128x128xf32>
    %8 = tpu.matmul %7, %4, %cst_6 {dimension_numbers = #tpu.dot_dimension_numbers<[2], [1], [1], [2], [0, 0, 0, 1, 1, 2], [0], [0]>} : vector<4x128x64xf32>, vector<4x64x128xf32>, vector<4x128x128xf32> -> vector<4x128x128xf32>
    %c0_7 = arith.constant 0 : index
    %c0_8 = arith.constant 0 : index
    %c0_9 = arith.constant 0 : index
    %9 = vector.load %arg4[%c0_7, %c0_8, %c0_9] : memref<4x128x128xf32, #tpu.memory_space<vmem>>, vector<4x128x128xf32>
    tpu.vector_store %arg4[%c0_7, %c0_8, %c0_9], %8 {strides = array<i32>} : memref<4x128x128xf32, #tpu.memory_space<vmem>>, vector<4x128x128xf32>,
    return
  }
  func.func @transform_0(%arg0: i32) -> (i32, i32) {
    %c0_i32 = arith.constant 0 : i32
    %c0_i32_0 = arith.constant 0 : i32
    %c0_i32_1 = arith.constant 0 : i32
    return %c0_i32, %c0_i32_0 : i32, i32
  }
  func.func @transform_1(%arg0: i32) -> (i32, i32) {
    %c0_i32 = arith.constant 0 : i32
    %c0_i32_0 = arith.constant 0 : i32
    %c0_i32_1 = arith.constant 0 : i32
    return %c0_i32, %c0_i32_0 : i32, i32
  }
  func.func @transform_2(%arg0: i32) -> (i32, i32, i32) {
    %c0_i32 = arith.constant 0 : i32
    %c0_i32_0 = arith.constant 0 : i32
    %c0_i32_1 = arith.constant 0 : i32
    return %arg0, %c0_i32, %c0_i32_0 : i32, i32, i32
  }
  func.func @transform_3(%arg0: i32) -> (i32, i32, i32) {
    %c0_i32 = arith.constant 0 : i32
    %c0_i32_0 = arith.constant 0 : i32
    %c0_i32_1 = arith.constant 0 : i32
    return %arg0, %c0_i32, %c0_i32_0 : i32, i32, i32
  }
}

</mosaic_0001>

<bundles_post_ra>
// kernel: tpu_custom_call.1
= control target key start
LH: loop header
LB: loop body
LE: loop exit
PB: predicated region body
PF: predicated region fallthrough
CT: control target
= control target key end

     0   :  { %8 = vsyncpa [#allocation3], 0  ;;  %s2608_s0 = inlined_call_operand.vmem [shape: f32[128,64], index: 0, kind: input, shape index: {}]   ;;  %s2609_s1 = inlined_call_operand.vmem [shape: f32[64,128], index: 1, kind: input, shape index: {}]   ;;  %s2610_s2 = inlined_call_operand.hbm [shape: f32[8,64,64], index: 2, kind: input, shape index: {}]   ;;  %s2611_s3 = inlined_call_operand.hbm [shape: f32[8,128,128], index: 3, kind: output, shape index: {}]  }
   0x1   :  { %10 = vsyncpa [#allocation3 + $0x1], 0 }
   0x2   :  { %11 = vsyncpa [#allocation4], 0 }
   0x3   :  { %13 = vsyncpa [#allocation4 + $0x1], 0  ;;  %s2080_s12 = smov 0   ;;  %s2082_s13 = smov 0  }
   0x4   :  { %s2084_s14 = smov 0   ;;  %s2086_s15 = smov 0  }
   0x5 LB: > { %s2101_s16 = sadd.s32 4294967295, %s2052_s15   ;;  %s1350_s17 = sadd.s32 4294967294, %s2052_s15   ;;  %s2052_s15 = sphi %s2086_s15, %s2624_s15   ;;  %s2048_s14 = sphi %s2084_s14, %s2623_s14   ;;  %s2044_s13 = sphi %s2082_s13, %s2622_s13   ;;  %s2040_s12 = sphi %s2080_s12, %s2621_s12  }
   0x6   : > { %s2105_s18 = sadd.s32 1, %s2052_s15   ;;  %s68_s19 = sadd.s32 1, %s2048_s14 }
   0x7   : > { %s65_s20 = ssub.s32 %s2052_s15, %s2105_s18  ;;  %p75_p0 = scmp.ne.s32.totalorder %s2048_s14, %s2044_s13 }
   0x8   : > { %p66_p1 = scmp.eq.s32.totalorder %s65_s20, 0  ;;  %p76_p2 = scmp.eq.s32.totalorder %s2052_s15, 0 }
   0x9   : > { %p81_p3 = scmp.ne.s32.totalorder %s2044_s13, %s2040_s12  ;;  %p82_p4 = scmp.eq.s32.totalorder %s2101_s16, 0 }
   0xa   : > { %s2117_s21 = scalar_select %p66_p1, %s2048_s14, %s68_s19  }
   0xb   : > { %p2119_p5 = por %p76_p2, %p75_p0  ;;  %p2123_p6 = por %p82_p4, %p81_p3 }
   0xc   : > { %p105_p7 = scmp.eq.s32.totalorder %s2101_s16, 1  ;;  %p111_p8 = scmp.eq.s32.totalorder %s1350_s17, 1 }
   0xd   : > { %p1918_p10 = scmp.lt.s32.totalorder %s2052_s15, 2  ;;  %s137_s26 = sand.u32 1, %s2048_s14  }
   0xe   : > { %p2130_p11 = por %p105_p7, %p75_p0  ;;  %p2134_p12 = por %p111_p8, %p81_p3 }
   0xf   : > { %s1463_s27 = sshll.u32 %s2052_s15, 12  ;;  %s1353_s28 = sshll.u32 %s137_s26, 8 }
  0x10   : > { %s2615_s24 = scalar_select %p2130_p11, 1, 0 }
  0x11   : > { %s2616_s25 = scalar_select %p2134_p12, 1, 0 }
  0x12   : > { %s2143_s4 = scalar_lea.hbm %s2610_s2, %s1463_s27  ;;  %s141_s5 = scalar_lea.vmem [#allocation2], %s1353_s28 }
  0x13   : > { %s149_s6 = sshll.u32 %s141_s5, 4  ;;  %p2147_p13 = pnand %p1918_p10, %p2119_p5  ;;  %s2151_s6 = int_to_ptr.vmem [resolvable:$true] %s149_s6 }
  0x14   : > { %s2153_s8 = scalar_lea.sflag [#allocation3], %s137_s26  ;;  %s1956_s9 = scalar_lea.hbm %s2143_s4, 4096 }
  0x15   : > { %p1957_p0 = scmp.ne.s32.totalorder %s2143_s4, %s1956_s9  ;;  %p1958_p1 = pneg %p2147_p13 }
  0x16   : > { %s1961_s17 = scalar_lea.hbm %s2610_s2, 8192  ;;  %p1962_p4 = scmp.lt.u32.totalorder %s2143_s4, %s2610_s2 }
  0x17   : > { %p1959_p2 = pnand %p1958_p1, %p1957_p0  ;;  %p1963_p5 = scmp.lt.u32.totalorder %s1961_s17, %s1956_s9 }
  0x18   : > { %p1965_p8 = scmp.lt.u32.totalorder %s1956_s9, %s2143_s4 }
  0x19   : > { %p1960_p3 = pneg %p1959_p2  ;;  %p1964_p7 = por %p1963_p5, %p1962_p4 }
  0x1b   : > { %p1966_p10 = por %p1965_p8, %p1964_p7 }
  0x1d   : > { %p1967_p9 = pnand %p1966_p10, %p1960_p3 }
  0x1f   : > { %1970 = shalt.err (!%p1967_p9)
}
  0x20   : > { %s1971_s22 = scalar_lea.vmem %s2151_s6, 4096  ;;  %s2054_s26 = smov [#allocation2]  }
  0x21   : > { %p1972_p0 = scmp.ne.s32.totalorder %s2151_s6, %s1971_s22  ;;  %s1976_s27 = sshll.u32 %s2054_s26, 4  ;;  %s1977_s27 = int_to_ptr.vmem [resolvable:$false] %s1976_s27 }
  0x22   : > { %s1978_s28 = scalar_lea.vmem %s1977_s27, 8192  ;;  %p1979_p11 = scmp.lt.s32.totalorder %s2151_s6, %s1977_s27 }
  0x23   : > { %p1974_p2 = pnand %p1972_p0, %p1958_p1  ;;  %p1980_p4 = scmp.lt.s32.totalorder %s1978_s28, %s1971_s22 }
  0x25   : > { %p1975_p12 = pneg %p1974_p2  ;;  %p1981_p5 = por %p1980_p4, %p1979_p11 }
  0x27   : > { %p1982_p7 = pnand %p1981_p5, %p1975_p12 }
  0x29   : > { %1985 = shalt.err (!%p1982_p7)
}
  0x2a   : > { %s2055_s29 = smov 128   ;;  %s2056_s30 = smov 8  }
  0x2b   : > { %1913 = dma.hbm_to_vmem [thread:$0]  (!%p2147_p13), %s2143_s4, 4096, %s2151_s6, %s2153_s8, %s2055_s29, %s2055_s29, %s2056_s30  }
  0x2c   : > { %p1357_p9 = scmp.ge.s32.totalorder %s2052_s15, 1  ;;  %p157_p1 = scmp.lt.s32.totalorder %s2052_s15, 3 }
  0x2e   : > { %p158_p3 = pnand %p1357_p9, %p157_p1 }
  0x2f   : > { %s2184_s5 = sand.u32 (!%p158_p3), 1, %s2044_s13  }
  0x30   : > { %161 = sbr.rel (%p158_p3) target bundleno = 626 (0x272), region = 32  ;;  %s1358_s9 = sshll.u32 (!%p158_p3), %s2184_s5, 8 }
  0x31   : > { %s164_s10 = scalar_lea.sflag (!%p158_p3), [#allocation3], %s2184_s5  ;;  %s2188_s11 = scalar_lea.vmem (!%p158_p3), [#allocation2], %s1358_s9 }
  0x37   : > { %2031 = dma.done.wait (%p2123_p6), %s164_s10, 4096  }
  0x38   : > { %2033 = vsyncadd (%p2123_p6), %s164_s10, 4294963200  ;;  %v224_v0 = vld [vmem:[%s2609_s1] sm:$0xff]  ;;  %v225_v1 = vld [vmem:[%s2609_s1 + $0x8] sm:$0xff]  ;;  %vm232_vm0 = vcmask 523264   ;;  %s1359_s9 = sshll.u32 %s2184_s5, 9  ;;  %s1465_s4 = sshll.u32 %s2101_s16, 13 }
  0x39   : > { %v226_v2 = vld [vmem:[%s2609_s1 + $0x10] sm:$0xff]  ;;  %v1826_v3 = vpack.c.bf16 %v225_v1, %v224_v0  ;;  %v227_v4 = vld [vmem:[%s2609_s1 + $0x18] sm:$0xff]  ;;  %v228_v6 = vld [vmem:[%s2609_s1 + $0x20] sm:$0xff]  ;;  %s2491_s10 = scalar_lea.vmem [#allocation5], %s1359_s9  ;;  %s2560_s8 = scalar_lea.hbm %s2611_s3, %s1465_s4 }
  0x3a   : > { %v1830_v5 = vpack.c.bf16 %v227_v4, %v226_v2  ;;  %v229_v7 = vld [vmem:[%s2609_s1 + $0x28] sm:$0xff]  ;;  %v192_v8 = vld [vmem:[%s2188_s11] sm:$0xff]  ;;  %v230_v10 = vld [vmem:[%s2609_s1 + $0x30] sm:$0xff]  ;;  %s1277_s6 = sshll.u32 %s2491_s10, 4  ;;  %s1263_s17 = scalar_lea.sflag [#allocation4], %s2184_s5  ;;  %s2562_s6 = int_to_ptr.vmem [resolvable:$true] %s1277_s6 }
  0x3b   : > { %1827 = vmatprep.subr.bf16.mxu0 %v1826_v3  ;;  %1618 = vmatprep.mubr.msk.f32.mxu0 %vm232_vm0, %v192_v8  ;;  %v1834_v9 = vpack.c.bf16 %v229_v7, %v228_v6  ;;  %v231_v11 = vld [vmem:[%s2609_s1 + $0x38] sm:$0xff]  ;;  %v193_v13 = vld [vmem:[%s2188_s11 + $0x8] sm:$0xff]  ;;  %v194_v14 = vld [vmem:[%s2188_s11 + $0x10] sm:$0xff]  ;;  %s1986_s16 = scalar_lea.vmem %s2562_s6, 8192  ;;  %p2618_p11 = scmp.ne.s32.totalorder %s2615_s24, 0 }
  0x3c   : > { %1829 = vmatpush3.bf16.msra.mxu0 %v1826_v3  ;;  %v1838_v12 = vpack.c.bf16 %v231_v11, %v230_v10  ;;  %v195_v15 = vld [vmem:[%s2188_s11 + $0x18] sm:$0xff]  ;;  %v196_v16 = vld [vmem:[%s2188_s11 + $0x20] sm:$0xff]  ;;  %v197_v17 = vld [vmem:[%s2188_s11 + $0x28] sm:$0xff]  ;;  %p1987_p6 = scmp.ne.s32.totalorder %s2562_s6, %s1986_s16  ;;  %s2057_s19 = smov [#allocation5]  }
  0x3d   : > { %1831 = vmatprep.subr.bf16.mxu0 %v1830_v5  ;;  %v198_v18 = vld [vmem:[%s2188_s11 + $0x30] sm:$0xff]  ;;  %v199_v19 = vld [vmem:[%s2188_s11 + $0x38] sm:$0xff]  ;;  %v200_v20 = vld [vmem:[%s2188_s11 + $0x40] sm:$0xff]  ;;  %s1990_s20 = sshll.u32 %s2057_s19, 4  ;;  %s1991_s20 = int_to_ptr.vmem [resolvable:$false] %s1990_s20 }
  0x3e   : > { %v201_v21 = vld [vmem:[%s2188_s11 + $0x48] sm:$0xff]  ;;  %v202_v22 = vld [vmem:[%s2188_s11 + $0x50] sm:$0xff]  ;;  %v203_v23 = vld [vmem:[%s2188_s11 + $0x58] sm:$0xff]  ;;  %p1988_p12 = pnand %p1987_p6, %p2618_p11  ;;  %s1992_s22 = scalar_lea.vmem %s1991_s20, 16384 }
  0x3f   : > { %v204_v24 = vld [vmem:[%s2188_s11 + $0x60] sm:$0xff]  ;;  %v205_v25 = vld [vmem:[%s2188_s11 + $0x68] sm:$0xff]  ;;  %v206_v26 = vld [vmem:[%s2188_s11 + $0x70] sm:$0xff]  ;;  %p1993_p8 = scmp.lt.s32.totalorder %s2562_s6, %s1991_s20  ;;  %p1994_p10 = scmp.lt.s32.totalorder %s1992_s22, %s1986_s16 }
  0x40   : > { %1833 = vmatpush3.bf16.msra.mxu0 %v1830_v5  ;;  %v207_v27 = vld [vmem:[%s2188_s11 + $0x78] sm:$0xff]  ;;  %v208_v28 = vld [vmem:[%s2188_s11 + $0x80] sm:$0xff]  ;;  %v209_v29 = vld [vmem:[%s2188_s11 + $0x88] sm:$0xff]  ;;  %p1989_p13 = pneg %p1988_p12 }
  0x41   : > { %1835 = vmatprep.subr.bf16.mxu0 %v1834_v9  ;;  %v210_v30 = vld [vmem:[%s2188_s11 + $0x90] sm:$0xff]  ;;  %v211_v31 = vld [vmem:[%s2188_s11 + $0x98] sm:$0xff]  ;;  %v212_v32 = vld [vmem:[%s2188_s11 + $0xa0] sm:$0xff]  ;;  %p1995_p0 = por %p1994_p10, %p1993_p8 }
  0x42   : > { %v213_v33 = vld [vmem:[%s2188_s11 + $0xa8] sm:$0xff]  ;;  %v214_v34 = vld [vmem:[%s2188_s11 + $0xb0] sm:$0xff]  ;;  %v215_v35 = vld [vmem:[%s2188_s11 + $0xb8] sm:$0xff] }
  0x43   : > { %v216_v36 = vld [vmem:[%s2188_s11 + $0xc0] sm:$0xff]  ;;  %v217_v37 = vld [vmem:[%s2188_s11 + $0xc8] sm:$0xff]  ;;  %v218_v38 = vld [vmem:[%s2188_s11 + $0xd0] sm:$0xff]  ;;  %p1996_p2 = pnand %p1995_p0, %p1989_p13 }
  0x44   : > { %1837 = vmatpush3.bf16.msra.mxu0 %v1834_v9  ;;  %v219_v39 = vld [vmem:[%s2188_s11 + $0xd8] sm:$0xff]  ;;  %v220_v40 = vld [vmem:[%s2188_s11 + $0xe0] sm:$0xff]  ;;  %v221_v41 = vld [vmem:[%s2188_s11 + $0xe8] sm:$0xff] }
  0x45   : > { %1839 = vmatprep.subr.bf16.mxu0 %v1838_v12  ;;  %v222_v42 = vld [vmem:[%s2188_s11 + $0xf0] sm:$0xff]  ;;  %v223_v43 = vld [vmem:[%s2188_s11 + $0xf8] sm:$0xff]  ;;  %v2285_v44 = vld [vmem:[%s2608_s0] sm:$0xff] }
  0x46   : > { %1682 = vmatprep.mubr.msk.f32.mxu1 %vm232_vm0, %v2285_v44  ;;  %v2294_v59 = vld [vmem:[%s2608_s0 + $0x8] sm:$0xff]  ;;  %v2299_v61 = vld [vmem:[%s2608_s0 + $0x10] sm:$0xff]  ;;  %v2308_v0 = vld [vmem:[%s2608_s0 + $0x18] sm:$0xff] }
  0x47   : > { %v2313_v2 = vld [vmem:[%s2608_s0 + $0x20] sm:$0xff]  ;;  %v2322_v5 = vld [vmem:[%s2608_s0 + $0x28] sm:$0xff]  ;;  %v2327_v7 = vld [vmem:[%s2608_s0 + $0x30] sm:$0xff] }
  0x48   : > { %1841 = vmatpush3.bf16.msra.mxu0 %v1838_v12  ;;  %v2336_v10 = vld [vmem:[%s2608_s0 + $0x38] sm:$0xff]  ;;  %v2341_v12 = vld [vmem:[%s2608_s0 + $0x40] sm:$0xff] }
  0x4b   : > { %1619 = vmatmul.mubr.msk.f32.vlgmr.msra.gmra.mrb[0].mxu0 %vm232_vm0, %v193_v13 }
  0x4c   : > { %1621 = vmatprep.mubr.msk.f32.mxu0 %vm232_vm0, %v194_v14 }
  0x4f   : > { %1622 = vmatmul.mubr.msk.f32.gmra.mrb[2].mxu0 %vm232_vm0, %v195_v15  ;;  %v2350_v15 = vld [vmem:[%s2608_s0 + $0x48] sm:$0xff] }
  0x50   : > { %1624 = vmatprep.mubr.msk.f32.mxu0 %vm232_vm0, %v196_v16 }
  0x53   : > { %1625 = vmatmul.mubr.msk.f32.gmra.mrb[4].mxu0 %vm232_vm0, %v197_v17  ;;  %v2355_v17 = vld [vmem:[%s2608_s0 + $0x50] sm:$0xff] }
  0x54   : > { %1627 = vmatprep.mubr.msk.f32.mxu0 %vm232_vm0, %v198_v18 }
  0x57   : > { %1628 = vmatmul.mubr.msk.f32.gmra.mrb[6].mxu0 %vm232_vm0, %v199_v19 }
  0x58   : > { %1630 = vmatprep.mubr.msk.f32.mxu0 %vm232_vm0, %v200_v20  ;;  %v2364_v20 = vld [vmem:[%s2608_s0 + $0x58] sm:$0xff] }
  0x5b   : > { %1631 = vmatmul.mubr.msk.f32.gmra.mrb[8].mxu0 %vm232_vm0, %v201_v21 }
  0x5c   : > { %1633 = vmatprep.mubr.msk.f32.mxu0 %vm232_vm0, %v202_v22  ;;  %v2369_v22 = vld [vmem:[%s2608_s0 + $0x60] sm:$0xff] }
  0x5f   : > { %1634 = vmatmul.mubr.msk.f32.gmra.mrb[10].mxu0 %vm232_vm0, %v203_v23 }
  0x60   : > { %1636 = vmatprep.mubr.msk.f32.mxu0 %vm232_vm0, %v204_v24 }
  0x63   : > { %1637 = vmatmul.mubr.msk.f32.gmra.mrb[12].mxu0 %vm232_vm0, %v205_v25  ;;  %v2378_v25 = vld [vmem:[%s2608_s0 + $0x68] sm:$0xff] }
  0x64   : > { %1639 = vmatprep.mubr.msk.f32.mxu0 %vm232_vm0, %v206_v26 }
  0x67   : > { %1640 = vmatmul.mubr.msk.f32.gmra.mrb[14].mxu0 %vm232_vm0, %v207_v27  ;;  %v2383_v27 = vld [vmem:[%s2608_s0 + $0x70] sm:$0xff] }
  0x68   : > { %1642 = vmatprep.mubr.msk.f32.mxu0 %vm232_vm0, %v208_v28 }
  0x6b   : > { %1643 = vmatmul.mubr.msk.f32.gmra.mrb[16].mxu0 %vm232_vm0, %v209_v29 }
  0x6c   : > { %1645 = vmatprep.mubr.msk.f32.mxu0 %vm232_vm0, %v210_v30  ;;  %v2392_v30 = vld [vmem:[%s2608_s0 + $0x78] sm:$0xff] }
  0x6f   : > { %1646 = vmatmul.mubr.msk.f32.gmra.mrb[18].mxu0 %vm232_vm0, %v211_v31 }
  0x70   : > { %1648 = vmatprep.mubr.msk.f32.mxu0 %vm232_vm0, %v212_v32 }
  0x73   : > { %1649 = vmatmul.mubr.msk.f32.gmra.mrb[20].mxu0 %vm232_vm0, %v213_v33 }
  0x74   : > { %1651 = vmatprep.mubr.msk.f32.mxu0 %vm232_vm0, %v214_v34 }
  0x77   : > { %1652 = vmatmul.mubr.msk.f32.gmra.mrb[22].mxu0 %vm232_vm0, %v215_v35 }
  0x78   : > { %1654 = vmatprep.mubr.msk.f32.mxu0 %vm232_vm0, %v216_v36 }
  0x7b   : > { %1655 = vmatmul.mubr.msk.f32.gmra.mrb[24].mxu0 %vm232_vm0, %v217_v37 }
  0x7c   : > { %1657 = vmatprep.mubr.msk.f32.mxu0 %vm232_vm0, %v218_v38 }
  0x7f   : > { %1658 = vmatmul.mubr.msk.f32.gmra.mrb[26].mxu0 %vm232_vm0, %v219_v39 }
  0x80   : > { %1660 = vmatprep.mubr.msk.f32.mxu0 %vm232_vm0, %v220_v40 }
  0x83   : > { %1661 = vmatmul.mubr.msk.f32.gmra.mrb[28].mxu0 %vm232_vm0, %v221_v41 }
  0x84   : > { %1663 = vmatprep.mubr.msk.f32.mxu0 %vm232_vm0, %v222_v42 }
  0x87   : > { %1664 = vmatmul.mubr.msk.f32.gmra.mrb[30].mxu0 %vm232_vm0, %v223_v43 }
  0x88   : > { %1762 = vmatprep.mubr.msk.f32.mxu0 %vm232_vm0, %v2285_v44 }
 0x11e   : > { %v1620_v45 = vpop.f32.mrb[0].mxu0 }
 0x11f   : > { %v395_v46 = vpop.f32.mrb[1].mxu0 }
 0x120   : > { %v1842_v47 = vpack.c.bf16 %v1620_v45, %v395_v46 }
 0x122   : > { %v1623_v48 = vpop.f32.mrb[2].mxu0  ;;  %1843 = vmatprep.subr.bf16.mxu1 %v1842_v47 }
 0x123   : > { %v405_v49 = vpop.f32.mrb[3].mxu0  ;;  %1845 = vmatpush3.bf16.msra.mxu1 %v1842_v47 }
 0x124   : > { %v1846_v50 = vpack.c.bf16 %v1623_v48, %v405_v49 }
 0x126   : > { %v1626_v51 = vpop.f32.mrb[4].mxu0  ;;  %1847 = vmatprep.subr.bf16.mxu1 %v1846_v50 }
 0x127   : > { %v415_v52 = vpop.f32.mrb[5].mxu0  ;;  %1849 = vmatpush3.bf16.msra.mxu1 %v1846_v50 }
 0x128   : > { %v1850_v53 = vpack.c.bf16 %v1626_v51, %v415_v52 }
 0x12a   : > { %v1629_v54 = vpop.f32.mrb[6].mxu0  ;;  %1851 = vmatprep.subr.bf16.mxu1 %v1850_v53 }
 0x12b   : > { %v425_v55 = vpop.f32.mrb[7].mxu0  ;;  %1853 = vmatpush3.bf16.msra.mxu1 %v1850_v53 }
 0x12c   : > { %v1854_v56 = vpack.c.bf16 %v1629_v54, %v425_v55 }
 0x12e   : > { %v1632_v57 = vpop.f32.mrb[8].mxu0  ;;  %1855 = vmatprep.subr.bf16.mxu1 %v1854_v56 }
 0x12f   : > { %v435_v58 = vpop.f32.mrb[9].mxu0  ;;  %1857 = vmatpush3.bf16.msra.mxu1 %v1854_v56 }
 0x130   : > { %v1858_v60 = vpack.c.bf16 %v1632_v57, %v435_v58 }
 0x132   : > { %v1635_v62 = vpop.f32.mrb[10].mxu0  ;;  %1859 = vmatprep.subr.bf16.mxu1 %v1858_v60  ;;  %1683 = vmatmul.mubr.msk.f32.vlgmr.msra.gmra.mrb[0].mxu1 %vm232_vm0, %v2294_v59 }
 0x133   : > { %v445_v63 = vpop.f32.mrb[11].mxu0  ;;  %1861 = vmatpush3.bf16.msra.mxu1 %v1858_v60  ;;  %1685 = vmatprep.mubr.msk.f32.mxu1 %vm232_vm0, %v2299_v61 }
 0x134   : > { %v1862_v1 = vpack.c.bf16 %v1635_v62, %v445_v63 }
 0x136   : > { %v1638_v3 = vpop.f32.mrb[12].mxu0  ;;  %1863 = vmatprep.subr.bf16.mxu1 %v1862_v1  ;;  %1686 = vmatmul.mubr.msk.f32.gmra.mrb[2].mxu1 %vm232_vm0, %v2308_v0 }
 0x137   : > { %v455_v4 = vpop.f32.mrb[13].mxu0  ;;  %1865 = vmatpush3.bf16.msra.mxu1 %v1862_v1  ;;  %1688 = vmatprep.mubr.msk.f32.mxu1 %vm232_vm0, %v2313_v2 }
 0x138   : > { %v1866_v6 = vpack.c.bf16 %v1638_v3, %v455_v4 }
 0x13a   : > { %v1641_v8 = vpop.f32.mrb[14].mxu0  ;;  %1867 = vmatprep.subr.bf16.mxu1 %v1866_v6  ;;  %1689 = vmatmul.mubr.msk.f32.gmra.mrb[4].mxu1 %vm232_vm0, %v2322_v5 }
 0x13b   : > { %v465_v9 = vpop.f32.mrb[15].mxu0  ;;  %1869 = vmatpush3.bf16.msra.mxu1 %v1866_v6  ;;  %1691 = vmatprep.mubr.msk.f32.mxu1 %vm232_vm0, %v2327_v7 }
 0x13c   : > { %v1870_v11 = vpack.c.bf16 %v1641_v8, %v465_v9 }
 0x13e   : > { %v1644_v13 = vpop.f32.mrb[16].mxu0  ;;  %1871 = vmatprep.subr.bf16.mxu1 %v1870_v11  ;;  %1692 = vmatmul.mubr.msk.f32.gmra.mrb[6].mxu1 %vm232_vm0, %v2336_v10 }
 0x13f   : > { %v475_v14 = vpop.f32.mrb[17].mxu0  ;;  %1873 = vmatpush3.bf16.msra.mxu1 %v1870_v11  ;;  %1694 = vmatprep.mubr.msk.f32.mxu1 %vm232_vm0, %v2341_v12 }
 0x140   : > { %v1874_v16 = vpack.c.bf16 %v1644_v13, %v475_v14 }
 0x142   : > { %1875 = vmatprep.subr.bf16.mxu0 %v1874_v16  ;;  %v1647_v18 = vpop.f32.mrb[18].mxu0  ;;  %1695 = vmatmul.mubr.msk.f32.gmra.mrb[8].mxu1 %vm232_vm0, %v2350_v15 }
 0x143   : > { %1877 = vmatpush3.bf16.msra.mxu0 %v1874_v16  ;;  %v485_v19 = vpop.f32.mrb[19].mxu0  ;;  %1697 = vmatprep.mubr.msk.f32.mxu1 %vm232_vm0, %v2355_v17 }
 0x144   : > { %v1878_v21 = vpack.c.bf16 %v1647_v18, %v485_v19 }
 0x146   : > { %1879 = vmatprep.subr.bf16.mxu0 %v1878_v21  ;;  %v1650_v23 = vpop.f32.mrb[20].mxu0  ;;  %1698 = vmatmul.mubr.msk.f32.gmra.mrb[10].mxu1 %vm232_vm0, %v2364_v20 }
 0x147   : > { %1881 = vmatpush3.bf16.msra.mxu0 %v1878_v21  ;;  %v495_v24 = vpop.f32.mrb[21].mxu0  ;;  %1700 = vmatprep.mubr.msk.f32.mxu1 %vm232_vm0, %v2369_v22 }
 0x148   : > { %v1882_v26 = vpack.c.bf16 %v1650_v23, %v495_v24 }
 0x14a   : > { %v1653_v28 = vpop.f32.mrb[22].mxu0  ;;  %1883 = vmatprep.subr.bf16.mxu0 %v1882_v26  ;;  %1701 = vmatmul.mubr.msk.f32.gmra.mrb[12].mxu1 %vm232_vm0, %v2378_v25 }
 0x14b   : > { %v505_v29 = vpop.f32.mrb[23].mxu0  ;;  %1885 = vmatpush3.bf16.msra.mxu0 %v1882_v26  ;;  %1703 = vmatprep.mubr.msk.f32.mxu1 %vm232_vm0, %v2383_v27 }
 0x14c   : > { %v1886_v31 = vpack.c.bf16 %v1653_v28, %v505_v29 }
 0x14e   : > { %v1656_v32 = vpop.f32.mrb[24].mxu0  ;;  %1887 = vmatprep.subr.bf16.mxu0 %v1886_v31  ;;  %1704 = vmatmul.mubr.msk.f32.gmra.mrb[14].mxu1 %vm232_vm0, %v2392_v30 }
 0x14f   : > { %v515_v33 = vpop.f32.mrb[25].mxu0  ;;  %1889 = vmatpush3.bf16.msra.mxu0 %v1886_v31  ;;  %1722 = vmatprep.mubr.msk.f32.mxu1 %vm232_vm0, %v2285_v44 }
 0x150   : > { %v1890_v34 = vpack.c.bf16 %v1656_v32, %v515_v33 }
 0x152   : > { %1891 = vmatprep.subr.bf16.mxu1 %v1890_v34  ;;  %1723 = vmatmul.mubr.msk.f32.vlgmr.msra.gmra.mrb[16].mxu1 %vm232_vm0, %v2294_v59  ;;  %v1659_v35 = vpop.f32.mrb[26].mxu0 }
 0x153   : > { %1893 = vmatpush3.bf16.msra.mxu1 %v1890_v34  ;;  %v525_v36 = vpop.f32.mrb[27].mxu0  ;;  %1725 = vmatprep.mubr.msk.f32.mxu1 %vm232_vm0, %v2299_v61 }
 0x154   : > { %v1894_v37 = vpack.c.bf16 %v1659_v35, %v525_v36  ;;  %1763 = vmatmul.mubr.msk.f32.vlgmr.msra.gmra.mrb[32].mxu0 %vm232_vm0, %v2294_v59 }
 0x155   : > { %1765 = vmatprep.mubr.msk.f32.mxu0 %vm232_vm0, %v2299_v61 }
 0x156   : > { %1726 = vmatmul.mubr.msk.f32.gmra.mrb[18].mxu1 %vm232_vm0, %v2308_v0  ;;  %1895 = vmatprep.subr.bf16.mxu1 %v1894_v37  ;;  %v1662_v38 = vpop.f32.mrb[28].mxu0 }
 0x157   : > { %1728 = vmatprep.mubr.msk.f32.mxu1 %vm232_vm0, %v2313_v2  ;;  %1897 = vmatpush3.bf16.msra.mxu1 %v1894_v37  ;;  %v535_v39 = vpop.f32.mrb[29].mxu0 }
 0x158   : > { %v1898_v40 = vpack.c.bf16 %v1662_v38, %v535_v39  ;;  %1766 = vmatmul.mubr.msk.f32.gmra.mrb[34].mxu0 %vm232_vm0, %v2308_v0 }
 0x159   : > { %1768 = vmatprep.mubr.msk.f32.mxu0 %vm232_vm0, %v2313_v2 }
 0x15a   : > { %1729 = vmatmul.mubr.msk.f32.gmra.mrb[20].mxu1 %vm232_vm0, %v2322_v5  ;;  %1899 = vmatprep.subr.bf16.mxu1 %v1898_v40  ;;  %v1665_v41 = vpop.f32.mrb[30].mxu0 }
 0x15b   : > { %1731 = vmatprep.mubr.msk.f32.mxu1 %vm232_vm0, %v2327_v7  ;;  %1901 = vmatpush3.bf16.msra.mxu1 %v1898_v40  ;;  %v545_v42 = vpop.f32.mrb[31].mxu0 }
 0x15c   : > { %v1902_v43 = vpack.c.bf16 %v1665_v41, %v545_v42  ;;  %1769 = vmatmul.mubr.msk.f32.gmra.mrb[36].mxu0 %vm232_vm0, %v2322_v5 }
 0x15d   : > { %1771 = vmatprep.mubr.msk.f32.mxu0 %vm232_vm0, %v2327_v7 }
 0x15e   : > { %1732 = vmatmul.mubr.msk.f32.gmra.mrb[22].mxu1 %vm232_vm0, %v2336_v10  ;;  %1903 = vmatprep.subr.bf16.mxu1 %v1902_v43 }
 0x15f   : > { %1734 = vmatprep.mubr.msk.f32.mxu1 %vm232_vm0, %v2341_v12  ;;  %1905 = vmatpush3.bf16.msra.mxu1 %v1902_v43 }
 0x160   : > { %1772 = vmatmul.mubr.msk.f32.gmra.mrb[38].mxu0 %vm232_vm0, %v2336_v10 }
 0x161   : > { %1774 = vmatprep.mubr.msk.f32.mxu0 %vm232_vm0, %v2341_v12 }
 0x162   : > { %1735 = vmatmul.mubr.msk.f32.gmra.mrb[24].mxu1 %vm232_vm0, %v2350_v15 }
 0x163   : > { %1737 = vmatprep.mubr.msk.f32.mxu1 %vm232_vm0, %v2355_v17 }
 0x164   : > { %1775 = vmatmul.mubr.msk.f32.gmra.mrb[40].mxu0 %vm232_vm0, %v2350_v15 }
 0x165   : > { %1777 = vmatprep.mubr.msk.f32.mxu0 %vm232_vm0, %v2355_v17 }
 0x166   : > { %1738 = vmatmul.mubr.msk.f32.gmra.mrb[26].mxu1 %vm232_vm0, %v2364_v20 }
 0x167   : > { %1740 = vmatprep.mubr.msk.f32.mxu1 %vm232_vm0, %v2369_v22 }
 0x168   : > { %1778 = vmatmul.mubr.msk.f32.gmra.mrb[42].mxu0 %vm232_vm0, %v2364_v20 }
 0x169   : > { %1780 = vmatprep.mubr.msk.f32.mxu0 %vm232_vm0, %v2369_v22 }
 0x16a   : > { %1741 = vmatmul.mubr.msk.f32.gmra.mrb[28].mxu1 %vm232_vm0, %v2378_v25 }
 0x16b   : > { %1743 = vmatprep.mubr.msk.f32.mxu1 %vm232_vm0, %v2383_v27 }
 0x16c   : > { %1781 = vmatmul.mubr.msk.f32.gmra.mrb[44].mxu0 %vm232_vm0, %v2378_v25 }
 0x16d   : > { %1783 = vmatprep.mubr.msk.f32.mxu0 %vm232_vm0, %v2383_v27 }
 0x16e   : > { %1744 = vmatmul.mubr.msk.f32.gmra.mrb[30].mxu1 %vm232_vm0, %v2392_v30 }
 0x16f   : > { %1802 = vmatprep.mubr.msk.f32.mxu1 %vm232_vm0, %v2285_v44 }
 0x170   : > { %1784 = vmatmul.mubr.msk.f32.gmra.mrb[46].mxu0 %vm232_vm0, %v2392_v30 }
 0x172   : > { %1803 = vmatmul.mubr.msk.f32.vlgmr.msra.gmra.mrb[32].mxu1 %vm232_vm0, %v2294_v59 }
 0x173   : > { %1805 = vmatprep.mubr.msk.f32.mxu1 %vm232_vm0, %v2299_v61 }
 0x176   : > { %1806 = vmatmul.mubr.msk.f32.gmra.mrb[34].mxu1 %vm232_vm0, %v2308_v0 }
 0x177   : > { %1808 = vmatprep.mubr.msk.f32.mxu1 %vm232_vm0, %v2313_v2 }
 0x17a   : > { %1809 = vmatmul.mubr.msk.f32.gmra.mrb[36].mxu1 %vm232_vm0, %v2322_v5 }
 0x17b   : > { %1811 = vmatprep.mubr.msk.f32.mxu1 %vm232_vm0, %v2327_v7 }
 0x17e   : > { %1812 = vmatmul.mubr.msk.f32.gmra.mrb[38].mxu1 %vm232_vm0, %v2336_v10 }
 0x17f   : > { %1814 = vmatprep.mubr.msk.f32.mxu1 %vm232_vm0, %v2341_v12 }
 0x182   : > { %1815 = vmatmul.mubr.msk.f32.gmra.mrb[40].mxu1 %vm232_vm0, %v2350_v15 }
 0x183   : > { %1817 = vmatprep.mubr.msk.f32.mxu1 %vm232_vm0, %v2355_v17 }
 0x186   : > { %1818 = vmatmul.mubr.msk.f32.gmra.mrb[42].mxu1 %vm232_vm0, %v2364_v20 }
 0x187   : > { %1820 = vmatprep.mubr.msk.f32.mxu1 %vm232_vm0, %v2369_v22 }
 0x18a   : > { %1821 = vmatmul.mubr.msk.f32.gmra.mrb[44].mxu1 %vm232_vm0, %v2378_v25 }
 0x18b   : > { %1823 = vmatprep.mubr.msk.f32.mxu1 %vm232_vm0, %v2383_v27 }
 0x18e   : > { %1824 = vmatmul.mubr.msk.f32.gmra.mrb[46].mxu1 %vm232_vm0, %v2392_v30 }
 0x205   : > { %v1684_v44 = vpop.f32.mrb[0].mxu1 }
 0x206   : > { %1199 = vst [vmem:[%s2491_s10 + $0x8] sm:$0xff] %v1684_v44  ;;  %v684_v45 = vpop.f32.mrb[1].mxu1 }
 0x207   : > { %1198 = vst [vmem:[%s2491_s10] sm:$0xff] %v684_v45 }
 0x209   : > { %v1687_v46 = vpop.f32.mrb[2].mxu1 }
 0x20a   : > { %1201 = vst [vmem:[%s2491_s10 + $0x18] sm:$0xff] %v1687_v46  ;;  %v694_v47 = vpop.f32.mrb[3].mxu1 }
 0x20b   : > { %1200 = vst [vmem:[%s2491_s10 + $0x10] sm:$0xff] %v694_v47 }
 0x20d   : > { %v1690_v48 = vpop.f32.mrb[4].mxu1 }
 0x20e   : > { %1203 = vst [vmem:[%s2491_s10 + $0x28] sm:$0xff] %v1690_v48  ;;  %v704_v49 = vpop.f32.mrb[5].mxu1 }
 0x20f   : > { %1202 = vst [vmem:[%s2491_s10 + $0x20] sm:$0xff] %v704_v49 }
 0x211   : > { %v1693_v50 = vpop.f32.mrb[6].mxu1 }
 0x212   : > { %1205 = vst [vmem:[%s2491_s10 + $0x38] sm:$0xff] %v1693_v50  ;;  %v714_v51 = vpop.f32.mrb[7].mxu1 }
 0x213   : > { %1204 = vst [vmem:[%s2491_s10 + $0x30] sm:$0xff] %v714_v51 }
 0x215   : > { %v1696_v52 = vpop.f32.mrb[8].mxu1 }
 0x216   : > { %1207 = vst [vmem:[%s2491_s10 + $0x48] sm:$0xff] %v1696_v52  ;;  %v724_v53 = vpop.f32.mrb[9].mxu1 }
 0x217   : > { %1206 = vst [vmem:[%s2491_s10 + $0x40] sm:$0xff] %v724_v53 }
 0x219   : > { %v1699_v54 = vpop.f32.mrb[10].mxu1 }
 0x21a   : > { %1209 = vst [vmem:[%s2491_s10 + $0x58] sm:$0xff] %v1699_v54  ;;  %v734_v55 = vpop.f32.mrb[11].mxu1 }
 0x21b   : > { %1208 = vst [vmem:[%s2491_s10 + $0x50] sm:$0xff] %v734_v55 }
 0x21d   : > { %v1702_v56 = vpop.f32.mrb[12].mxu1 }
 0x21e   : > { %1211 = vst [vmem:[%s2491_s10 + $0x68] sm:$0xff] %v1702_v56  ;;  %v744_v57 = vpop.f32.mrb[13].mxu1 }
 0x21f   : > { %1210 = vst [vmem:[%s2491_s10 + $0x60] sm:$0xff] %v744_v57 }
 0x221   : > { %v1705_v58 = vpop.f32.mrb[14].mxu1 }
 0x222   : > { %1213 = vst [vmem:[%s2491_s10 + $0x78] sm:$0xff] %v1705_v58  ;;  %v754_v59 = vpop.f32.mrb[15].mxu1 }
 0x223   : > { %1212 = vst [vmem:[%s2491_s10 + $0x70] sm:$0xff] %v754_v59 }
 0x225   : > { %v1724_v60 = vpop.f32.mrb[16].mxu1 }
 0x226   : > { %1215 = vst [vmem:[%s2491_s10 + $0x88] sm:$0xff] %v1724_v60  ;;  %v829_v61 = vpop.f32.mrb[17].mxu1 }
 0x227   : > { %1214 = vst [vmem:[%s2491_s10 + $0x80] sm:$0xff] %v829_v61  ;;  %v1764_v62 = vpop.f32.mrb[32].mxu0 }
 0x228   : > { %1231 = vst [vmem:[%s2491_s10 + $0x108] sm:$0xff] %v1764_v62  ;;  %v974_v63 = vpop.f32.mrb[33].mxu0 }
 0x229   : > { %v1727_v0 = vpop.f32.mrb[18].mxu1  ;;  %1230 = vst [vmem:[%s2491_s10 + $0x100] sm:$0xff] %v974_v63 }
 0x22a   : > { %1217 = vst [vmem:[%s2491_s10 + $0x98] sm:$0xff] %v1727_v0  ;;  %v839_v1 = vpop.f32.mrb[19].mxu1 }
 0x22b   : > { %1216 = vst [vmem:[%s2491_s10 + $0x90] sm:$0xff] %v839_v1  ;;  %v1767_v2 = vpop.f32.mrb[34].mxu0 }
 0x22c   : > { %1233 = vst [vmem:[%s2491_s10 + $0x118] sm:$0xff] %v1767_v2  ;;  %v984_v3 = vpop.f32.mrb[35].mxu0 }
 0x22d   : > { %v1730_v4 = vpop.f32.mrb[20].mxu1  ;;  %1232 = vst [vmem:[%s2491_s10 + $0x110] sm:$0xff] %v984_v3 }
 0x22e   : > { %1219 = vst [vmem:[%s2491_s10 + $0xa8] sm:$0xff] %v1730_v4  ;;  %v849_v5 = vpop.f32.mrb[21].mxu1 }
 0x22f   : > { %1218 = vst [vmem:[%s2491_s10 + $0xa0] sm:$0xff] %v849_v5  ;;  %v1770_v6 = vpop.f32.mrb[36].mxu0 }
 0x230   : > { %1235 = vst [vmem:[%s2491_s10 + $0x128] sm:$0xff] %v1770_v6  ;;  %v994_v7 = vpop.f32.mrb[37].mxu0 }
 0x231   : > { %v1733_v8 = vpop.f32.mrb[22].mxu1  ;;  %1234 = vst [vmem:[%s2491_s10 + $0x120] sm:$0xff] %v994_v7 }
 0x232   : > { %1221 = vst [vmem:[%s2491_s10 + $0xb8] sm:$0xff] %v1733_v8  ;;  %v859_v9 = vpop.f32.mrb[23].mxu1 }
 0x233   : > { %1220 = vst [vmem:[%s2491_s10 + $0xb0] sm:$0xff] %v859_v9  ;;  %v1773_v10 = vpop.f32.mrb[38].mxu0 }
 0x234   : > { %1237 = vst [vmem:[%s2491_s10 + $0x138] sm:$0xff] %v1773_v10  ;;  %v1004_v11 = vpop.f32.mrb[39].mxu0 }
 0x235   : > { %v1736_v12 = vpop.f32.mrb[24].mxu1  ;;  %1236 = vst [vmem:[%s2491_s10 + $0x130] sm:$0xff] %v1004_v11 }
 0x236   : > { %1223 = vst [vmem:[%s2491_s10 + $0xc8] sm:$0xff] %v1736_v12  ;;  %v869_v13 = vpop.f32.mrb[25].mxu1 }
 0x237   : > { %1222 = vst [vmem:[%s2491_s10 + $0xc0] sm:$0xff] %v869_v13  ;;  %v1776_v14 = vpop.f32.mrb[40].mxu0 }
 0x238   : > { %1239 = vst [vmem:[%s2491_s10 + $0x148] sm:$0xff] %v1776_v14  ;;  %v1014_v15 = vpop.f32.mrb[41].mxu0 }
 0x239   : > { %v1739_v16 = vpop.f32.mrb[26].mxu1  ;;  %1238 = vst [vmem:[%s2491_s10 + $0x140] sm:$0xff] %v1014_v15 }
 0x23a   : > { %1225 = vst [vmem:[%s2491_s10 + $0xd8] sm:$0xff] %v1739_v16  ;;  %v879_v17 = vpop.f32.mrb[27].mxu1 }
 0x23b   : > { %1224 = vst [vmem:[%s2491_s10 + $0xd0] sm:$0xff] %v879_v17  ;;  %v1779_v18 = vpop.f32.mrb[42].mxu0 }
 0x23c   : > { %1241 = vst [vmem:[%s2491_s10 + $0x158] sm:$0xff] %v1779_v18  ;;  %v1024_v19 = vpop.f32.mrb[43].mxu0 }
 0x23d   : > { %v1742_v20 = vpop.f32.mrb[28].mxu1  ;;  %1240 = vst [vmem:[%s2491_s10 + $0x150] sm:$0xff] %v1024_v19 }
 0x23e   : > { %1227 = vst [vmem:[%s2491_s10 + $0xe8] sm:$0xff] %v1742_v20  ;;  %v889_v21 = vpop.f32.mrb[29].mxu1 }
 0x23f   : > { %1226 = vst [vmem:[%s2491_s10 + $0xe0] sm:$0xff] %v889_v21  ;;  %v1782_v22 = vpop.f32.mrb[44].mxu0 }
 0x240   : > { %1243 = vst [vmem:[%s2491_s10 + $0x168] sm:$0xff] %v1782_v22  ;;  %v1034_v23 = vpop.f32.mrb[45].mxu0 }
 0x241   : > { %v1745_v24 = vpop.f32.mrb[30].mxu1  ;;  %1242 = vst [vmem:[%s2491_s10 + $0x160] sm:$0xff] %v1034_v23 }
 0x242   : > { %1229 = vst [vmem:[%s2491_s10 + $0xf8] sm:$0xff] %v1745_v24  ;;  %v899_v25 = vpop.f32.mrb[31].mxu1 }
 0x243   : > { %1228 = vst [vmem:[%s2491_s10 + $0xf0] sm:$0xff] %v899_v25  ;;  %v1785_v26 = vpop.f32.mrb[46].mxu0 }
 0x244   : > { %1245 = vst [vmem:[%s2491_s10 + $0x178] sm:$0xff] %v1785_v26  ;;  %v1044_v27 = vpop.f32.mrb[47].mxu0 }
 0x245   : > { %v1804_v28 = vpop.f32.mrb[32].mxu1  ;;  %1244 = vst [vmem:[%s2491_s10 + $0x170] sm:$0xff] %v1044_v27 }
 0x246   : > { %1247 = vst [vmem:[%s2491_s10 + $0x188] sm:$0xff] %v1804_v28  ;;  %v1119_v29 = vpop.f32.mrb[33].mxu1 }
 0x247   : > { %1246 = vst [vmem:[%s2491_s10 + $0x180] sm:$0xff] %v1119_v29 }
 0x249   : > { %v1807_v30 = vpop.f32.mrb[34].mxu1 }
 0x24a   : > { %1249 = vst [vmem:[%s2491_s10 + $0x198] sm:$0xff] %v1807_v30  ;;  %v1129_v31 = vpop.f32.mrb[35].mxu1 }
 0x24b   : > { %1248 = vst [vmem:[%s2491_s10 + $0x190] sm:$0xff] %v1129_v31 }
 0x24d   : > { %v1810_v32 = vpop.f32.mrb[36].mxu1 }
 0x24e   : > { %1251 = vst [vmem:[%s2491_s10 + $0x1a8] sm:$0xff] %v1810_v32  ;;  %v1139_v33 = vpop.f32.mrb[37].mxu1 }
 0x24f   : > { %1250 = vst [vmem:[%s2491_s10 + $0x1a0] sm:$0xff] %v1139_v33 }
 0x251   : > { %v1813_v34 = vpop.f32.mrb[38].mxu1 }
 0x252   : > { %1253 = vst [vmem:[%s2491_s10 + $0x1b8] sm:$0xff] %v1813_v34  ;;  %v1149_v35 = vpop.f32.mrb[39].mxu1 }
 0x253   : > { %1252 = vst [vmem:[%s2491_s10 + $0x1b0] sm:$0xff] %v1149_v35 }
 0x255   : > { %v1816_v36 = vpop.f32.mrb[40].mxu1 }
 0x256   : > { %1255 = vst [vmem:[%s2491_s10 + $0x1c8] sm:$0xff] %v1816_v36  ;;  %v1159_v37 = vpop.f32.mrb[41].mxu1 }
 0x257   : > { %1254 = vst [vmem:[%s2491_s10 + $0x1c0] sm:$0xff] %v1159_v37 }
 0x259   : > { %v1819_v38 = vpop.f32.mrb[42].mxu1 }
 0x25a   : > { %1257 = vst [vmem:[%s2491_s10 + $0x1d8] sm:$0xff] %v1819_v38  ;;  %v1169_v39 = vpop.f32.mrb[43].mxu1 }
 0x25b   : > { %1256 = vst [vmem:[%s2491_s10 + $0x1d0] sm:$0xff] %v1169_v39 }
 0x25d   : > { %v1822_v40 = vpop.f32.mrb[44].mxu1 }
 0x25e   : > { %1259 = vst [vmem:[%s2491_s10 + $0x1e8] sm:$0xff] %v1822_v40  ;;  %v1179_v41 = vpop.f32.mrb[45].mxu1 }
 0x25f   : > { %1258 = vst [vmem:[%s2491_s10 + $0x1e0] sm:$0xff] %v1179_v41 }
 0x261   : > { %v1825_v42 = vpop.f32.mrb[46].mxu1 }
 0x262   : > { %1261 = vst [vmem:[%s2491_s10 + $0x1f8] sm:$0xff] %v1825_v42  ;;  %v1189_v43 = vpop.f32.mrb[47].mxu1 }
 0x263   : > { %1260 = vst [vmem:[%s2491_s10 + $0x1f0] sm:$0xff] %v1189_v43 }
 0x264   : > { %1999 = shalt.err (!%p1996_p2)
}
 0x265   : > { %s2000_s23 = scalar_lea.hbm %s2560_s8, 8192  ;;  %s2004_s28 = scalar_lea.hbm %s2611_s3, 16384 }
 0x266   : > { %p2001_p4 = scmp.ne.s32.totalorder %s2560_s8, %s2000_s23  ;;  %p2005_p9 = scmp.lt.u32.totalorder %s2560_s8, %s2611_s3 }
 0x267   : > { %p2006_p1 = scmp.lt.u32.totalorder %s2004_s28, %s2000_s23  ;;  %p2008_p6 = scmp.lt.u32.totalorder %s2000_s23, %s2560_s8 }
 0x268   : > { %p2002_p5 = pnand %p2001_p4, %p2618_p11 }
 0x269   : > { %p2007_p3 = por %p2006_p1, %p2005_p9 }
 0x26a   : > { %p2003_p7 = pneg %p2002_p5 }
 0x26b   : > { %p2009_p12 = por %p2008_p6, %p2007_p3 }
 0x26d   : > { %p2010_p13 = pnand %p2009_p12, %p2003_p7 }
 0x26f   : > { %2013 = shalt.err (!%p2010_p13)
}
 0x270   : > { %s2058_s9 = smov 128   ;;  %s2059_s10 = smov 8  }
 0x271   : > { %1908 = dma.vmem_to_hbm [thread:$0]  (%p2618_p11), %s2562_s6, 8192, %s2560_s8, %s1263_s17, %s2058_s9, %s2058_s9, %s2059_s10  }
 0x272 PF: > { %s1292_s4 = sand.u32 1, %s2040_s12   ;;  %p2619_p8 = scmp.ne.s32.totalorder %s2616_s25, 0 }
 0x273   : > { %p2620_p10 = scmp.ge.s32.totalorder %s2052_s15, 2  ;;  %s1293_s11 = scalar_lea.sflag [#allocation4], %s1292_s4 }
 0x275   : > { %p1915_p0 = pnand %p2620_p10, %p2619_p8 }
 0x277   : > { %2035 = dma.done.wait (!%p1915_p0), %s1293_s11, 8192  }
 0x278   : > { %2037 = vsyncadd (!%p1915_p0), %s1293_s11, 4294959104  ;;  %p16_p2 = scmp.ge.s32.totalorder %s2105_s18, 4   ;;  %s2621_s12 = smov %s2044_s13 }
 0x279   : > { %s2622_s13 = smov %s2048_s14  ;;  %s2623_s14 = smov %s2117_s21 }
 0x27a   : > { %s2624_s15 = smov %s2105_s18  ;;  %18 = sbr.rel (!%p16_p2) target bundleno = 5 (0x5), region = 77 }
 0x281   :  { %1298 = vsyncpa [#allocation3], 1 }
 0x282   :  { %1300 = vsyncpa [#allocation3 + $0x1], 1 }
 0x283   :  { %1301 = vsyncpa [#allocation4], 1 }
 0x284   :  { %1303 = vsyncpa [#allocation4 + $0x1], 1 }

</bundles_post_ra>
